<compile_context>
chip_gen: v7x
topology: tpu7x:2x2x1
jax: 0.10.0
libtpu: 0.0.40
codegen_flags: <defaults>
</compile_context>

<pallas_src>
import jax
import jax.numpy as jnp
from jax.experimental import pallas as pl
from jax.experimental.pallas import tpu as pltpu


def _elu(x):
    # ELU, alpha = 1.0. Negative branch uses exp(min(x,0)) - 1: the clamp avoids
    # evaluating exp on large positives in the untaken branch; max deviation from
    # expm1 is < 6e-8 absolute (one f32 ulp at 1.0), and plain exp is guaranteed
    # to lower on every TPU generation.
    return jnp.where(x > 0, x, jnp.exp(jnp.minimum(x, 0.0)) - 1.0)


def actor_critic_kernel(
    # inputs (resident across the T grid except x, which is tiled per step)
    x_ref,        # [1, B, NIN]  f32   (block for step t)
    hx0_ref,      # [B, H]       f32   initial hidden state
    cx0_ref,      # [B, H]       f32   initial cell state
    w1_ref,       # [NIN, H]     bf16
    b1_ref,       # [1, H]       f32
    wlstm_ref,    # [2H, 4H]     bf16  = [Wih ; Whh] (pre-transposed, stacked)
    blstm_ref,    # [1, 4H]      f32   = bih + bhh
    whead_ref,    # [H, 1+A]     bf16  = [Wc | Wa]
    bhead_ref,    # [1, 1+A]     f32   = [bc | ba]
    # outputs
    head_ref,     # [1, B, 1+A]  f32   (block for step t): [critic | actor]
    hx_out_ref,   # [B, H]       f32   (VMEM-resident carry + final output)
    cx_out_ref,   # [B, H]       f32
):
    t = pl.program_id(0)
    H = hx_out_ref.shape[-1]

    # Seed the recurrent carry on the first grid step. hx_out/cx_out use a
    # constant index_map along T, so they stay resident in VMEM and act as the
    # carry buffers across steps (P3 accumulator pattern).
    @pl.when(t == 0)
    def _():
        hx_out_ref[...] = hx0_ref[...]
        cx_out_ref[...] = cx0_ref[...]

    x = x_ref[0]                      # [B, NIN] f32
    hx = hx_out_ref[...]              # [B, H]   f32
    cx = cx_out_ref[...]              # [B, H]   f32

    # ---- linear1 + ELU (bf16 MXU operands, f32 accumulate & elementwise) ----
    h1 = jnp.dot(x.astype(jnp.bfloat16), w1_ref[...],
                 preferred_element_type=jnp.float32) + b1_ref[...]
    h1 = _elu(h1)

    # ---- fused LSTMCell: gates = [h1 | hx] @ [Wih ; Whh] + (bih + bhh) ----
    xh = jnp.concatenate([h1, hx], axis=-1).astype(jnp.bfloat16)   # [B, 2H]
    gates = jnp.dot(xh, wlstm_ref[...],
                    preferred_element_type=jnp.float32) + blstm_ref[...]  # [B, 4H]

    # Two full-vreg transcendentals (sigmoid, tanh) + lane-mask select of the
    # 'g' block, instead of four sub-vreg launches. Gate order (PyTorch): i,f,g,o.
    sig = jax.nn.sigmoid(gates)
    th = jnp.tanh(gates)
    lane = jax.lax.broadcasted_iota(jnp.int32, gates.shape, 1)
    act = jnp.where((lane >= 2 * H) & (lane < 3 * H), th, sig)

    i_g = act[:, 0 * H:1 * H]
    f_g = act[:, 1 * H:2 * H]
    g_g = act[:, 2 * H:3 * H]
    o_g = act[:, 3 * H:4 * H]

    cx_new = f_g * cx + i_g * g_g
    hx_new = o_g * jnp.tanh(cx_new)

    # carry for next step / final outputs
    hx_out_ref[...] = hx_new
    cx_out_ref[...] = cx_new

    # ---- fused heads: [critic | actor] = hx_new @ [Wc | Wa] + [bc | ba] ----
    head = jnp.dot(hx_new.astype(jnp.bfloat16), whead_ref[...],
                   preferred_element_type=jnp.float32) + bhead_ref[...]
    head_ref[0] = head


@jax.jit
def actor_critic_rollout(x_seq, hx, cx, fp):
    """Run T recurrent steps in one pallas_call.

    x_seq: [T, B, num_inputs] f32; hx, cx: [B, H] f32; fp: fused params (see fuse_params).
    Returns (critic [T,B,1], actor [T,B,A], hx_T [B,H], cx_T [B,H]).
    """
    T, B, NIN = x_seq.shape
    H = hx.shape[1]
    NHEAD = fp["whead"].shape[1]          # 1 + num_actions

    head_seq, hx_out, cx_out = pl.pallas_call(
        actor_critic_kernel,
        out_shape=(
            jax.ShapeDtypeStruct((T, B, NHEAD), jnp.float32),   # [critic | actor]
            jax.ShapeDtypeStruct((B, H), jnp.float32),          # hx_T
            jax.ShapeDtypeStruct((B, H), jnp.float32),          # cx_T
        ),
        grid_spec=pltpu.PrefetchScalarGridSpec(
            num_scalar_prefetch=0,
            grid=(T,),
            in_specs=[
                pl.BlockSpec((1, B, NIN), lambda t: (t, 0, 0)),      # x (per step)
                pl.BlockSpec((B, H), lambda t: (0, 0)),              # hx0 (resident)
                pl.BlockSpec((B, H), lambda t: (0, 0)),              # cx0 (resident)
                pl.BlockSpec((NIN, H), lambda t: (0, 0)),            # w1
                pl.BlockSpec((1, H), lambda t: (0, 0)),              # b1
                pl.BlockSpec((2 * H, 4 * H), lambda t: (0, 0)),      # wlstm
                pl.BlockSpec((1, 4 * H), lambda t: (0, 0)),          # blstm
                pl.BlockSpec((H, NHEAD), lambda t: (0, 0)),          # whead
                pl.BlockSpec((1, NHEAD), lambda t: (0, 0)),          # bhead
            ],
            out_specs=[
                pl.BlockSpec((1, B, NHEAD), lambda t: (t, 0, 0)),    # heads (per step)
                pl.BlockSpec((B, H), lambda t: (0, 0)),              # hx carry/out
                pl.BlockSpec((B, H), lambda t: (0, 0)),              # cx carry/out
            ],
        ),
        # Time axis is a true recurrence -> "arbitrary". If an env/batch grid
        # axis is added later, mark it "parallel" for v7x megacore.
        compiler_params=pltpu.CompilerParams(dimension_semantics=("arbitrary",)),
    )(
        x_seq, hx, cx,
        fp["w1"], fp["b1"], fp["wlstm"], fp["blstm"], fp["whead"], fp["bhead"],
    )

    critic = head_seq[:, :, :1]
    actor = head_seq[:, :, 1:]
    return critic, actor, hx_out, cx_out


def actor_critic_forward(x, hx, cx, fp):
    """Single-step forward, exactly the PyTorch module's forward semantics."""
    critic, actor, hx_out, cx_out = actor_critic_rollout(x[None], hx, cx, fp)
    return critic[0], actor[0], hx_out, cx_out


# --------------------------- parameters ---------------------------

def init_params(key, num_inputs, hidden, num_actions):
    """PyTorch-style uniform(-1/sqrt(fan_in), 1/sqrt(fan_in)) init.

    Weights stored transposed ([in, out]) for x @ W; biases as [1, out].
    """
    ks = jax.random.split(key, 10)

    def u(k, shape, fan_in):
        bound = 1.0 / jnp.sqrt(jnp.float32(fan_in))
        return jax.random.uniform(k, shape, jnp.float32, -bound, bound)

    return {
        "w1": u(ks[0], (num_inputs, hidden), num_inputs),
        "b1": u(ks[1], (1, hidden), num_inputs),
        "wih": u(ks[2], (hidden, 4 * hidden), hidden),
        "bih": u(ks[3], (1, 4 * hidden), hidden),
        "whh": u(ks[4], (hidden, 4 * hidden), hidden),
        "bhh": u(ks[5], (1, 4 * hidden), hidden),
        "wc": u(ks[6], (hidden, 1), hidden),
        "bc": u(ks[7], (1, 1), hidden),
        "wa": u(ks[8], (hidden, num_actions), hidden),
        "ba": u(ks[9], (1, num_actions), hidden),
    }


def fuse_params(p, matmul_dtype=jnp.bfloat16):
    """Pack per-layer params into the fused layout the kernel expects.

    Matmul weights are stored in bf16 (MXU operands); biases stay f32 (added to
    the f32 accumulator).
    """
    return {
        "w1": p["w1"].astype(matmul_dtype),
        "b1": p["b1"],
        "wlstm": jnp.concatenate([p["wih"], p["whh"]], axis=0).astype(matmul_dtype),
        "blstm": p["bih"] + p["bhh"],
        "whead": jnp.concatenate([p["wc"], p["wa"]], axis=1).astype(matmul_dtype),
        "bhead": jnp.concatenate([p["bc"], p["ba"]], axis=1),
    }


# --------------------------- pure-JAX reference ---------------------------

def reference_step(x, hx, cx, p):
    """Matches the kernel's numerics: bf16 matmul operands, f32 everything else."""
    def mm(a, w):
        return jnp.dot(a.astype(jnp.bfloat16), w.astype(jnp.bfloat16),
                       preferred_element_type=jnp.float32)

    h1 = _elu(mm(x, p["w1"]) + p["b1"])
    gates = mm(h1, p["wih"]) + p["bih"] + mm(hx, p["whh"]) + p["bhh"]
    H = hx.shape[1]
    i = jax.nn.sigmoid(gates[:, :H])
    f = jax.nn.sigmoid(gates[:, H:2 * H])
    g = jnp.tanh(gates[:, 2 * H:3 * H])
    o = jax.nn.sigmoid(gates[:, 3 * H:])
    cx_new = f * cx + i * g
    hx_new = o * jnp.tanh(cx_new)
    critic = mm(hx_new, p["wc"]) + p["bc"]
    actor = mm(hx_new, p["wa"]) + p["ba"]
    return critic, actor, hx_new, cx_new


def reference_rollout(x_seq, hx, cx, p):
    critics, actors = [], []
    for t in range(x_seq.shape[0]):
        critic, actor, hx, cx = reference_step(x_seq[t], hx, cx, p)
        critics.append(critic)
        actors.append(actor)
    return jnp.stack(critics), jnp.stack(actors), hx, cx


# --------------------------- demo / test ---------------------------

if __name__ == "__main__":
    # Small shapes consistent with the module: hidden=32, 8 actions, 16 inputs.
    # Batch raised to 8 (sublane-aligned); T=4 rollout exercises the in-kernel loop.
    T, B, NUM_INPUTS, HIDDEN, NUM_ACTIONS = 4, 8, 16, 32, 8

    key = jax.random.PRNGKey(0)
    k_x, k_h, k_c, k_p = jax.random.split(key, 4)

    x_seq = jax.random.normal(k_x, (T, B, NUM_INPUTS), jnp.float32)
    hx = jax.random.normal(k_h, (B, HIDDEN), jnp.float32)
    cx = jax.random.normal(k_c, (B, HIDDEN), jnp.float32)

    params = init_params(k_p, NUM_INPUTS, HIDDEN, NUM_ACTIONS)
    fp = fuse_params(params)

    TOL = dict(atol=1e-3, rtol=1e-3)

    # 1) single-step call: exactly the module's forward(inputs, (hx, cx))
    critic1, actor1, hx1, cx1 = actor_critic_forward(x_seq[0], hx, cx, fp)
    jax.block_until_ready((critic1, actor1, hx1, cx1))
    critic1_r, actor1_r, hx1_r, cx1_r = reference_step(x_seq[0], hx, cx, params)
    assert jnp.allclose(critic1, critic1_r, **TOL)
    assert jnp.allclose(actor1, actor1_r, **TOL)
    assert jnp.allclose(hx1, hx1_r, **TOL)
    assert jnp.allclose(cx1, cx1_r, **TOL)

    # 2) T-step rollout: weights resident in VMEM, hx/cx carried across grid steps
    critic, actor, hx_T, cx_T = actor_critic_rollout(x_seq, hx, cx, fp)
    jax.block_until_ready((critic, actor, hx_T, cx_T))
    critic_r, actor_r, hx_r, cx_r = reference_rollout(x_seq, hx, cx, params)
    assert jnp.allclose(critic, critic_r, **TOL)
    assert jnp.allclose(actor, actor_r, **TOL)
    assert jnp.allclose(hx_T, hx_r, **TOL)
    assert jnp.allclose(cx_T, cx_r, **TOL)

    print("KERNEL_OK")
</pallas_src>

<mosaic_0001>
module attributes {stable_mosaic.version = 11 : i64} {
  func.func @actor_critic_kernel(%arg0: i32, %arg1: memref<1x8x16xf32, #tpu.memory_space<vmem>>, %arg2: memref<8x32xf32, #tpu.memory_space<vmem>>, %arg3: memref<8x32xf32, #tpu.memory_space<vmem>>, %arg4: memref<16x32xbf16, #tpu.memory_space<vmem>>, %arg5: memref<1x32xf32, #tpu.memory_space<vmem>>, %arg6: memref<64x128xbf16, #tpu.memory_space<vmem>>, %arg7: memref<1x128xf32, #tpu.memory_space<vmem>>, %arg8: memref<32x9xbf16, #tpu.memory_space<vmem>>, %arg9: memref<1x9xf32, #tpu.memory_space<vmem>>, %arg10: memref<1x8x9xf32, #tpu.memory_space<vmem>>, %arg11: memref<8x32xf32, #tpu.memory_space<vmem>>, %arg12: memref<8x32xf32, #tpu.memory_space<vmem>>) attributes {dimension_semantics = [#tpu.dimension_semantics<arbitrary>], iteration_bounds = array<i64: 1>, scalar_prefetch = 0 : i64, scratch_operands = 0 : i64, tpu.core_type = #tpu.core_type<tc>, window_params = [{transform_indices = @transform_0, window_bounds = array<i64: 1, 8, 16>}, {pipeline_mode = #tpu.pipeline_mode<synchronous>, transform_indices = @transform_1, window_bounds = array<i64: 8, 32>}, {pipeline_mode = #tpu.pipeline_mode<synchronous>, transform_indices = @transform_2, window_bounds = array<i64: 8, 32>}, {pipeline_mode = #tpu.pipeline_mode<synchronous>, transform_indices = @transform_3, window_bounds = array<i64: 16, 32>}, {pipeline_mode = #tpu.pipeline_mode<synchronous>, transform_indices = @transform_4, window_bounds = array<i64: 1, 32>}, {pipeline_mode = #tpu.pipeline_mode<synchronous>, transform_indices = @transform_5, window_bounds = array<i64: 64, 128>}, {pipeline_mode = #tpu.pipeline_mode<synchronous>, transform_indices = @transform_6, window_bounds = array<i64: 1, 128>}, {pipeline_mode = #tpu.pipeline_mode<synchronous>, transform_indices = @transform_7, window_bounds = array<i64: 32, 9>}, {pipeline_mode = #tpu.pipeline_mode<synchronous>, transform_indices = @transform_8, window_bounds = array<i64: 1, 9>}, {transform_indices = @transform_9, window_bounds = array<i64: 1, 8, 9>}, {pipeline_mode = #tpu.pipeline_mode<synchronous>, transform_indices = @transform_10, window_bounds = array<i64: 8, 32>}, {pipeline_mode = #tpu.pipeline_mode<synchronous>, transform_indices = @transform_11, window_bounds = array<i64: 8, 32>}]} {
    %c0_i32 = arith.constant 0 : i32
    %0 = arith.cmpi eq, %arg0, %c0_i32 : i32
    %1 = arith.extui %0 : i1 to i32
    %c0_i32_0 = arith.constant 0 : i32
    %2 = arith.cmpi ne, %1, %c0_i32_0 : i32
    scf.if %2 {
      %c0_32 = arith.constant 0 : index
      %c0_33 = arith.constant 0 : index
      %61 = vector.load %arg2[%c0_32, %c0_33] : memref<8x32xf32, #tpu.memory_space<vmem>>, vector<8x32xf32>
      %c0_34 = arith.constant 0 : index
      %c0_35 = arith.constant 0 : index
      %62 = vector.load %arg11[%c0_34, %c0_35] : memref<8x32xf32, #tpu.memory_space<vmem>>, vector<8x32xf32>
      tpu.vector_store %arg11[%c0_34, %c0_35], %61 {strides = array<i32>} : memref<8x32xf32, #tpu.memory_space<vmem>>, vector<8x32xf32>,
      %c0_36 = arith.constant 0 : index
      %c0_37 = arith.constant 0 : index
      %63 = vector.load %arg3[%c0_36, %c0_37] : memref<8x32xf32, #tpu.memory_space<vmem>>, vector<8x32xf32>
      %c0_38 = arith.constant 0 : index
      %c0_39 = arith.constant 0 : index
      %64 = vector.load %arg12[%c0_38, %c0_39] : memref<8x32xf32, #tpu.memory_space<vmem>>, vector<8x32xf32>
      tpu.vector_store %arg12[%c0_38, %c0_39], %63 {strides = array<i32>} : memref<8x32xf32, #tpu.memory_space<vmem>>, vector<8x32xf32>,
    } else {
    }
    %c0 = arith.constant 0 : index
    %c0_1 = arith.constant 0 : index
    %c0_2 = arith.constant 0 : index
    %3 = vector.load %arg1[%c0, %c0_1, %c0_2] : memref<1x8x16xf32, #tpu.memory_space<vmem>>, vector<1x8x16xf32>
    %4 = vector.shape_cast %3 : vector<1x8x16xf32> to vector<8x16xf32>
    %c0_3 = arith.constant 0 : index
    %c0_4 = arith.constant 0 : index
    %5 = vector.load %arg11[%c0_3, %c0_4] : memref<8x32xf32, #tpu.memory_space<vmem>>, vector<8x32xf32>
    %c0_5 = arith.constant 0 : index
    %c0_6 = arith.constant 0 : index
    %6 = vector.load %arg12[%c0_5, %c0_6] : memref<8x32xf32, #tpu.memory_space<vmem>>, vector<8x32xf32>
    %7 = arith.truncf %4 : vector<8x16xf32> to vector<8x16xbf16>
    %c0_7 = arith.constant 0 : index
    %c0_8 = arith.constant 0 : index
    %8 = vector.load %arg4[%c0_7, %c0_8] : memref<16x32xbf16, #tpu.memory_space<vmem>>, vector<16x32xbf16>
    %cst = arith.constant dense<0.000000e+00> : vector<8x32xf32>
    %9 = tpu.matmul %7, %8, %cst {dimension_numbers = #tpu.dot_dimension_numbers<[1], [0], [0], [1], [0, 0, 1, 1], [], []>} : vector<8x16xbf16>, vector<16x32xbf16>, vector<8x32xf32> -> vector<8x32xf32>
    %c0_9 = arith.constant 0 : index
    %c0_10 = arith.constant 0 : index
    %10 = vector.load %arg5[%c0_9, %c0_10] : memref<1x32xf32, #tpu.memory_space<vmem>>, vector<1x32xf32>
    %11 = vector.broadcast %10 : vector<1x32xf32> to vector<8x32xf32>
    %12 = arith.addf %9, %11 : vector<8x32xf32>
    %cst_11 = arith.constant 0.000000e+00 : f32
    %13 = vector.broadcast %cst_11 : f32 to vector<8x32xf32>
    %14 = arith.cmpf ogt, %12, %13 : vector<8x32xf32>
    %cst_12 = arith.constant 0.000000e+00 : f32
    %15 = vector.broadcast %cst_12 : f32 to vector<8x32xf32>
    %16 = arith.minimumf %12, %15 : vector<8x32xf32>
    %17 = math.exp %16 : vector<8x32xf32>
    %cst_13 = arith.constant 1.000000e+00 : f32
    %18 = vector.broadcast %cst_13 : f32 to vector<8x32xf32>
    %19 = arith.subf %17, %18 : vector<8x32xf32>
    %20 = arith.select %14, %12, %19 : vector<8x32xi1>, vector<8x32xf32>
    %21 = tpu.concatenate %20, %5 in 1 : vector<8x32xf32>, vector<8x32xf32> -> vector<8x64xf32>
    %22 = arith.truncf %21 : vector<8x64xf32> to vector<8x64xbf16>
    %c0_14 = arith.constant 0 : index
    %c0_15 = arith.constant 0 : index
    %23 = vector.load %arg6[%c0_14, %c0_15] : memref<64x128xbf16, #tpu.memory_space<vmem>>, vector<64x128xbf16>
    %cst_16 = arith.constant dense<0.000000e+00> : vector<8x128xf32>
    %24 = tpu.matmul %22, %23, %cst_16 {dimension_numbers = #tpu.dot_dimension_numbers<[1], [0], [0], [1], [0, 0, 1, 1], [], []>} : vector<8x64xbf16>, vector<64x128xbf16>, vector<8x128xf32> -> vector<8x128xf32>
    %c0_17 = arith.constant 0 : index
    %c0_18 = arith.constant 0 : index
    %25 = vector.load %arg7[%c0_17, %c0_18] : memref<1x128xf32, #tpu.memory_space<vmem>>, vector<1x128xf32>
    %26 = vector.broadcast %25 : vector<1x128xf32> to vector<8x128xf32>
    %27 = arith.addf %24, %26 : vector<8x128xf32>
    %28 = arith.negf %27 : vector<8x128xf32>
    %29 = math.exp %28 : vector<8x128xf32>
    %cst_19 = arith.constant 1.000000e+00 : f32
    %30 = vector.broadcast %cst_19 : f32 to vector<8x128xf32>
    %31 = arith.addf %30, %29 : vector<8x128xf32>
    %32 = arith.divf %30, %31 : vector<8x128xf32>
    %33 = math.tanh %27 : vector<8x128xf32>
    %34 = tpu.iota {dimensions = array<i32: 1>} : vector<8x128xi32>
    %c64_i32 = arith.constant 64 : i32
    %35 = vector.broadcast %c64_i32 : i32 to vector<8x128xi32>
    %36 = arith.cmpi sge, %34, %35 : vector<8x128xi32>
    %c96_i32 = arith.constant 96 : i32
    %37 = vector.broadcast %c96_i32 : i32 to vector<8x128xi32>
    %38 = arith.cmpi slt, %34, %37 : vector<8x128xi32>
    %39 = arith.andi %36, %38 : vector<8x128xi1>
    %40 = arith.select %39, %33, %32 : vector<8x128xi1>, vector<8x128xf32>
    %41 = vector.extract_strided_slice %40 {offsets = [0, 0], sizes = [8, 32], strides = [1, 1]} : vector<8x128xf32> to vector<8x32xf32>
    %42 = vector.extract_strided_slice %40 {offsets = [0, 32], sizes = [8, 32], strides = [1, 1]} : vector<8x128xf32> to vector<8x32xf32>
    %43 = vector.extract_strided_slice %40 {offsets = [0, 64], sizes = [8, 32], strides = [1, 1]} : vector<8x128xf32> to vector<8x32xf32>
    %44 = vector.extract_strided_slice %40 {offsets = [0, 96], sizes = [8, 32], strides = [1, 1]} : vector<8x128xf32> to vector<8x32xf32>
    %45 = arith.mulf %42, %6 : vector<8x32xf32>
    %46 = arith.mulf %41, %43 : vector<8x32xf32>
    %47 = arith.addf %45, %46 : vector<8x32xf32>
    %48 = math.tanh %47 : vector<8x32xf32>
    %49 = arith.mulf %44, %48 : vector<8x32xf32>
    %c0_20 = arith.constant 0 : index
    %c0_21 = arith.constant 0 : index
    %50 = vector.load %arg11[%c0_20, %c0_21] : memref<8x32xf32, #tpu.memory_space<vmem>>, vector<8x32xf32>
    tpu.vector_store %arg11[%c0_20, %c0_21], %49 {strides = array<i32>} : memref<8x32xf32, #tpu.memory_space<vmem>>, vector<8x32xf32>,
    %c0_22 = arith.constant 0 : index
    %c0_23 = arith.constant 0 : index
    %51 = vector.load %arg12[%c0_22, %c0_23] : memref<8x32xf32, #tpu.memory_space<vmem>>, vector<8x32xf32>
    tpu.vector_store %arg12[%c0_22, %c0_23], %47 {strides = array<i32>} : memref<8x32xf32, #tpu.memory_space<vmem>>, vector<8x32xf32>,
    %52 = arith.truncf %49 : vector<8x32xf32> to vector<8x32xbf16>
    %c0_24 = arith.constant 0 : index
    %c0_25 = arith.constant 0 : index
    %53 = vector.load %arg8[%c0_24, %c0_25] : memref<32x9xbf16, #tpu.memory_space<vmem>>, vector<32x9xbf16>
    %cst_26 = arith.constant dense<0.000000e+00> : vector<8x9xf32>
    %54 = tpu.matmul %52, %53, %cst_26 {dimension_numbers = #tpu.dot_dimension_numbers<[1], [0], [0], [1], [0, 0, 1, 1], [], []>} : vector<8x32xbf16>, vector<32x9xbf16>, vector<8x9xf32> -> vector<8x9xf32>
    %c0_27 = arith.constant 0 : index
    %c0_28 = arith.constant 0 : index
    %55 = vector.load %arg9[%c0_27, %c0_28] : memref<1x9xf32, #tpu.memory_space<vmem>>, vector<1x9xf32>
    %56 = vector.broadcast %55 : vector<1x9xf32> to vector<8x9xf32>
    %57 = arith.addf %54, %56 : vector<8x9xf32>
    %c0_29 = arith.constant 0 : index
    %c0_30 = arith.constant 0 : index
    %c0_31 = arith.constant 0 : index
    %58 = vector.load %arg10[%c0_29, %c0_30, %c0_31] : memref<1x8x9xf32, #tpu.memory_space<vmem>>, vector<1x8x9xf32>
    %59 = vector.shape_cast %58 : vector<1x8x9xf32> to vector<8x9xf32>
    %60 = vector.shape_cast %57 : vector<8x9xf32> to vector<1x8x9xf32>
    tpu.vector_store %arg10[%c0_29, %c0_30, %c0_31], %60 {strides = array<i32>} : memref<1x8x9xf32, #tpu.memory_space<vmem>>, vector<1x8x9xf32>,
    return
  }
  func.func @transform_0(%arg0: i32) -> (i32, i32, i32) {
    %c0_i32 = arith.constant 0 : i32
    %c0_i32_0 = arith.constant 0 : i32
    %c0_i32_1 = arith.constant 0 : i32
    return %arg0, %c0_i32, %c0_i32_0 : i32, i32, i32
  }
  func.func @transform_1(%arg0: i32) -> (i32, i32) {
    %c0_i32 = arith.constant 0 : i32
    %c0_i32_0 = arith.constant 0 : i32
    %c0_i32_1 = arith.constant 0 : i32
    return %c0_i32, %c0_i32_0 : i32, i32
  }
  func.func @transform_2(%arg0: i32) -> (i32, i32) {
    %c0_i32 = arith.constant 0 : i32
    %c0_i32_0 = arith.constant 0 : i32
    %c0_i32_1 = arith.constant 0 : i32
    return %c0_i32, %c0_i32_0 : i32, i32
  }
  func.func @transform_3(%arg0: i32) -> (i32, i32) {
    %c0_i32 = arith.constant 0 : i32
    %c0_i32_0 = arith.constant 0 : i32
    %c0_i32_1 = arith.constant 0 : i32
    return %c0_i32, %c0_i32_0 : i32, i32
  }
  func.func @transform_4(%arg0: i32) -> (i32, i32) {
    %c0_i32 = arith.constant 0 : i32
    %c0_i32_0 = arith.constant 0 : i32
    %c0_i32_1 = arith.constant 0 : i32
    return %c0_i32, %c0_i32_0 : i32, i32
  }
  func.func @transform_5(%arg0: i32) -> (i32, i32) {
    %c0_i32 = arith.constant 0 : i32
    %c0_i32_0 = arith.constant 0 : i32
    %c0_i32_1 = arith.constant 0 : i32
    return %c0_i32, %c0_i32_0 : i32, i32
  }
  func.func @transform_6(%arg0: i32) -> (i32, i32) {
    %c0_i32 = arith.constant 0 : i32
    %c0_i32_0 = arith.constant 0 : i32
    %c0_i32_1 = arith.constant 0 : i32
    return %c0_i32, %c0_i32_0 : i32, i32
  }
  func.func @transform_7(%arg0: i32) -> (i32, i32) {
    %c0_i32 = arith.constant 0 : i32
    %c0_i32_0 = arith.constant 0 : i32
    %c0_i32_1 = arith.constant 0 : i32
    return %c0_i32, %c0_i32_0 : i32, i32
  }
  func.func @transform_8(%arg0: i32) -> (i32, i32) {
    %c0_i32 = arith.constant 0 : i32
    %c0_i32_0 = arith.constant 0 : i32
    %c0_i32_1 = arith.constant 0 : i32
    return %c0_i32, %c0_i32_0 : i32, i32
  }
  func.func @transform_9(%arg0: i32) -> (i32, i32, i32) {
    %c0_i32 = arith.constant 0 : i32
    %c0_i32_0 = arith.constant 0 : i32
    %c0_i32_1 = arith.constant 0 : i32
    return %arg0, %c0_i32, %c0_i32_0 : i32, i32, i32
  }
  func.func @transform_10(%arg0: i32) -> (i32, i32) {
    %c0_i32 = arith.constant 0 : i32
    %c0_i32_0 = arith.constant 0 : i32
    %c0_i32_1 = arith.constant 0 : i32
    return %c0_i32, %c0_i32_0 : i32, i32
  }
  func.func @transform_11(%arg0: i32) -> (i32, i32) {
    %c0_i32 = arith.constant 0 : i32
    %c0_i32_0 = arith.constant 0 : i32
    %c0_i32_1 = arith.constant 0 : i32
    return %c0_i32, %c0_i32_0 : i32, i32
  }
}

</mosaic_0001>

<bundles_post_ra>
// kernel: actor_critic_rollout.1
= control target key start
LH: loop header
LB: loop body
LE: loop exit
PB: predicated region body
PF: predicated region fallthrough
CT: control target
= control target key end

     0   :  { %17 = vsyncpa [#allocation3], 0  ;;  %s742_s0 = inlined_call_operand.vmem [shape: f32[1,8,16], index: 0, kind: input, shape index: {}]   ;;  %s743_s1 = inlined_call_operand.vmem [shape: f32[8,32], index: 1, kind: input, shape index: {}]   ;;  %s744_s2 = inlined_call_operand.hbm [shape: f32[8,32], index: 2, kind: input, shape index: {}]   ;;  %s745_s3 = inlined_call_operand.hbm [shape: bf16[16,32], index: 3, kind: input, shape index: {}]   ;;  %s746_s4 = inlined_call_operand.vmem [shape: f32[1,32], index: 4, kind: input, shape index: {}]   ;;  %s747_s5 = inlined_call_operand.vmem [shape: bf16[64,128], index: 5, kind: input, shape index: {}]   ;;  %s748_s6 = inlined_call_operand.vmem [shape: f32[1,128], index: 6, kind: input, shape index: {}]   ;;  %s749_s7 = inlined_call_operand.vmem [shape: bf16[32,9], index: 7, kind: input, shape index: {}]   ;;  %s750_s8 = inlined_call_operand.vmem [shape: f32[1,9], index: 8, kind: input, shape index: {}]   ;;  %s751_s9 = inlined_call_operand.vmem [shape: f32[1,8,9], index: 9, kind: output, shape index: {0}]   ;;  %s752_s10 = inlined_call_operand.hbm [shape: f32[8,32], index: 10, kind: output, shape index: {1}]   ;;  %s753_s11 = inlined_call_operand.hbm [shape: f32[8,32], index: 11, kind: output, shape index: {2}]  }
   0x1   :  { %18 = vsyncpa [#allocation6], 0 }
   0x2   :  { %19 = vsyncpa [#allocation4], 0 }
   0x3   :  { %20 = vsyncpa [#allocation9], 0  ;;  %s556_s17 = smov [#allocation2]   ;;  %s557_s19 = smov [#allocation5]  }
   0x4   :  { %s31_s18 = sshll.u32 %s556_s17, 4  ;;  %s40_s20 = sshll.u32 %s557_s19, 4  ;;  %s32_s18 = int_to_ptr.vmem [resolvable:$true] %s31_s18  ;;  %s626_s20 = int_to_ptr.vmem [resolvable:$true] %s40_s20 }
   0x5   :  { %s460_s23 = scalar_lea.hbm %s744_s2, 128 }
   0x6   :  { %p461_p0 = scmp.ne.s32.totalorder %s744_s2, %s460_s23  ;;  %p464_p1 = scmp.lt.u32.totalorder %s460_s23, %s744_s2 }
   0x8   :  { %p466_p2 = pnand %p464_p1, %p461_p0 }
   0xa   :  { %469 = shalt.err (!%p466_p2)
}
   0xb   :  { %s470_s28 = scalar_lea.vmem %s32_s18, 128  ;;  %p475_p4 = scmp.lt.s32.totalorder %s32_s18, %s32_s18 }
   0xc   :  { %p471_p3 = scmp.ne.s32.totalorder %s32_s18, %s470_s28  ;;  %p476_p5 = scmp.lt.s32.totalorder %s470_s28, %s470_s28 }
   0xe   :  { %p477_p6 = por %p476_p5, %p475_p4 }
  0x10   :  { %p478_p7 = pnand %p477_p6, %p471_p3 }
  0x12   :  { %481 = shalt.err (!%p478_p7)
}
  0x13   :  { %34 = dma.hbm_to_vmem [thread:$0]  %s744_s2, 128, %s32_s18, [#allocation3]  }
  0x14   :  { %s482_s14 = scalar_lea.hbm %s745_s3, 128 }
  0x15   :  { %p483_p8 = scmp.ne.s32.totalorder %s745_s3, %s482_s14  ;;  %p486_p9 = scmp.lt.u32.totalorder %s482_s14, %s745_s3 }
  0x17   :  { %p488_p10 = pnand %p486_p9, %p483_p8 }
  0x19   :  { %491 = shalt.err (!%p488_p10)
}
  0x1a   :  { %s492_s21 = scalar_lea.vmem %s626_s20, 128  ;;  %p497_p12 = scmp.lt.s32.totalorder %s626_s20, %s626_s20 }
  0x1b   :  { %p493_p11 = scmp.ne.s32.totalorder %s626_s20, %s492_s21  ;;  %p498_p13 = scmp.lt.s32.totalorder %s492_s21, %s492_s21 }
  0x1d   :  { %p499_p0 = por %p498_p13, %p497_p12 }
  0x1f   :  { %p500_p1 = pnand %p499_p0, %p493_p11 }
  0x21   :  { %503 = shalt.err (!%p500_p1)
}
  0x22   :  { %s558_s2 = smov 64   ;;  %s559_s18 = smov 4  }
  0x23   :  { %46 = dma.hbm_to_vmem [thread:$0]  %s745_s3, 128, %s626_s20, [#allocation6], %s558_s2, %s558_s2, %s559_s18  }
  0x24   :  { %548 = dma.done.wait [#allocation3], 128  }
  0x25   :  { %549 = vsyncadd [#allocation3], 4294967168 }
  0x26   :  { %550 = dma.done.wait [#allocation6], 128  }
  0x27   :  { %551 = vsyncadd [#allocation6], 4294967168  ;;  %v560_v0 = vmov 0.0   ;;  %vm561_vm0 = vmmov 0   ;;  %vm69_vm1 = vcmask 261120   ;;  %v443_v1 = vld [vmem:[#allocation5] sm:$0xff]   ;;  %v239_v34 = vlaneseq }
  0x28   :  { %407 = vmatprep.subr.bf16.mxu0 %v560_v0  ;;  %409 = vmatprep.mubr.msk.bf16.mxu0 %vm561_vm0, %v560_v0  ;;  %v73_v2 = vld [vmem:[%s742_s0] sm:$0xff]  ;;  %vm92_vm2 = vcmask 130048   ;;  %s562_s26 = smov 32   ;;  %v445_v7 = vld [vmem:[%s747_s5 + $0x8] sm:$0xff]   ;;  %v446_v8 = vld [vmem:[%s747_s5 + $0x10] sm:$0xff]   ;;  %vm188_vm4 = vcmask 523264  }
  0x29   :  { %413 = vmatprep.subr.bf16.mxu1 %v560_v0  ;;  %421 = vmatprep.mubr.msk.bf16.mxu1 %vm561_vm0, %v560_v0  ;;  %v68_v3 = vld [vmem:[%s743_s1] sm:$0xff]  ;;  %v76_v4 = vpack.c.bf16 %v73_v2, %v73_v2  ;;  %v447_v9 = vld [vmem:[%s747_s5 + $0x18] sm:$0xff]   ;;  %v240_v36 = vand.u32 127, %v239_v34  ;;  %v449_v47 = vld [vmem:[%s749_s7 + $0x8] sm:$0xff]   ;;  %s563_s21 = smov 96   ;;  %s565_s18 = smov [#allocation8]  }
  0x2a   :  { %408 = vmatpush3.bf16.msra.mxu0 %v443_v1  ;;  %70 = vst.msk [vmem:[#allocation7] sm:$0xff] %vm69_vm1, %v68_v3  ;;  %v444_v6 = vld [vmem:[%s747_s5] sm:$0xff]   ;;  %s366_s22 = sshll.u32 %s565_s18, 4  ;;  %s367_s22 = int_to_ptr.vmem [resolvable:$true] %s366_s22 }
  0x2b   :  { %425 = vmatprep.subr.bf16.mxu0 %v560_v0  ;;  %414 = vmatpush3.bf16.msra.mxu1 %v444_v6  ;;  %v71_v10 = vld [vmem:[#allocation2] sm:$0xff]  ;;  %vm241_vm5 = vcmp.ge.s32.totalorder %v240_v36, 64  ;;  %vm242_vm6 = vcmp.lt.s32.totalorder %v240_v36, 96 }
  0x2c   :  { %415 = vmatprep.subr.bf16.mxu1 %v560_v0  ;;  %72 = vst.msk [vmem:[#allocation8] sm:$0xff] %vm69_vm1, %v71_v10  ;;  %v382_v12 = vld [vmem:[%s746_s4] ss:$0 sm:$0xff]  ;;  %vm243_vm7 = vmand %vm241_vm5, %vm242_vm6 }
  0x2d   :  { %410 = vmatmul.mubr.msk.bf16.vlgmr.msra.gmra.mrb[0].mxu0 %vm92_vm2, %v76_v4  ;;  %v386_v26 = vld [vmem:[%s748_s6] ss:$0 sm:$0xff] }
  0x2e   :  { %429 = vmatprep.mubr.msk.bf16.mxu0 %vm561_vm0, %v560_v0  ;;  %v448_v46 = vld [vmem:[%s749_s7] sm:$0xff]   ;;  %s564_s7 = smov [#allocation7]  }
  0x2f   :  { %416 = vmatpush3.bf16.msra.mxu1 %v445_v7  ;;  %426 = vmatpush3.bf16.msra.mxu0 %v448_v46 }
  0x30   :  { %417 = vmatprep.subr.bf16.mxu1 %v560_v0  ;;  %427 = vmatprep.subr.bf16.mxu0 %v560_v0 }
  0x31   :  { %v74_v5 = vld [vmem:[#allocation7] sm:$0xff] }
  0x32   :  { %143 = vrot.lane.b32.xlu0 %v74_v5, %s562_s26 }
  0x33   :  { %418 = vmatpush3.bf16.msra.mxu1 %v446_v8  ;;  %v75_v11 = vld [vmem:[#allocation8] sm:$0xff]  ;;  %428 = vmatpush3.bf16.msra.mxu0 %v449_v47 }
  0x34   :  { %419 = vmatprep.subr.bf16.mxu1 %v560_v0  ;;  %246 = vrot.lane.b32.xlu1 %v75_v11, %s562_s26 }
  0x37   :  { %420 = vmatpush3.bf16.msra.mxu1 %v447_v9 }
  0xa4   :  { %v144_v22 = vpop.permute.xlu0 %143 }
  0xa6   :  { %v247_v42 = vpop.permute.xlu1 %246 }
 0x100   :  { %v130_v13 = vpop.f32.mrb[0].mxu0 }
 0x101   :  { %v131_v14 = vadd.f32 %v382_v12, %v130_v13  ;;  %v411_v15 = vpop.f32.mrb[1].mxu0 }
 0x102   :  { %v133_v16 = vpop.f32.mrb[2].mxu0 }
 0x103   :  { %v137_v17 = vmin.f32 %v131_v14, 0.0  ;;  %v412_v18 = vpop.f32.mrb[3].mxu0  ;;  %vm136_vm3 = vcmp.gt.f32.partialorder %v131_v14, 0.0 }
 0x105   :  { %v138_v19 = vmul.f32 1.442695, %v137_v17 }
 0x107   :  { %450 = vpow2.f32 %v138_v19 }
 0x111   :  { %v451_v20 = vpop.eup %450 }
 0x112   :  { %v385_v21 = vadd.f32 -1.0, %v451_v20 }
 0x114   :  { %v141_v23 = vsel %vm136_vm3, %v131_v14, %v385_v21 }
 0x115   :  { %v147_v24 = vsel %vm69_vm1, %v141_v23, %v144_v22 }
 0x116   :  { %v148_v25 = vpack.c.bf16 %v147_v24, %v147_v24 }
 0x118   :  { %422 = vmatmul.mubr.msk.bf16.vlgmr.msra.gmra.mrb[0].mxu1 %vm188_vm4, %v148_v25 }
 0x1eb   :  { %v226_v27 = vpop.f32.mrb[0].mxu1 }
 0x1ec   :  { %v227_v28 = vadd.f32 %v386_v26, %v226_v27  ;;  %v423_v29 = vpop.f32.mrb[1].mxu1 }
 0x1ed   :  { %v229_v30 = vpop.f32.mrb[2].mxu1 }
 0x1ee   :  { %v392_v31 = vmul.f32 -1.442695, %v227_v28  ;;  %v424_v32 = vpop.f32.mrb[3].mxu1 }
 0x1f0   :  { %452 = vpow2.f32 %v392_v31 }
 0x1f1   :  { %454 = vtanh.f32 %v227_v28 }
 0x1fa   :  { %v453_v33 = vpop.eup %452 }
 0x1fb   :  { %v235_v35 = vadd.f32 1.0, %v453_v33  ;;  %v455_v37 = vpop.eup %454 }
 0x1fd   :  { %456 = vrcp.f32 %v235_v35 }
 0x207   :  { %v457_v38 = vpop.eup %456 }
 0x208   :  { %v244_v39 = vsel %vm243_vm7, %v455_v37, %v457_v38 }
 0x209   :  { %251 = vrot.lane.b32.xlu0 %v244_v39, %s558_s2  ;;  %v249_v43 = vmul.f32 %v247_v42, %v244_v39 }
 0x27b   :  { %v252_v40 = vpop.permute.xlu0 %251 }
 0x27c   :  { %v254_v41 = vmul.f32 %v252_v40, %v244_v39 }
 0x27e   :  { %256 = vrot.lane.b32.xlu1 %v254_v41, %s562_s26 }
 0x2f0   :  { %v257_v44 = vpop.permute.xlu1 %256 }
 0x2f1   :  { %v259_v45 = vadd.f32 %v257_v44, %v249_v43 }
 0x2f3   :  { %458 = vtanh.f32 %v259_v45 }
 0x2fd   :  { %v459_v48 = vpop.eup %458 }
 0x2fe   :  { %262 = vrot.lane.b32.xlu0 %v459_v48, %s558_s2  ;;  %s356_s2 = sshll.u32 %s564_s7, 4  ;;  %s357_s2 = int_to_ptr.vmem [resolvable:$true] %s356_s2 }
 0x2ff   :  { %s504_s23 = scalar_lea.vmem %s357_s2, 128  ;;  %p509_p3 = scmp.lt.s32.totalorder %s357_s2, %s357_s2 }
 0x300   :  { %p505_p2 = scmp.ne.s32.totalorder %s357_s2, %s504_s23  ;;  %p510_p4 = scmp.lt.s32.totalorder %s504_s23, %s504_s23 }
 0x302   :  { %p511_p5 = por %p510_p4, %p509_p3 }
 0x304   :  { %p512_p6 = pnand %p511_p5, %p505_p2 }
 0x370   :  { %v263_v49 = vpop.permute.xlu0 %262 }
 0x371   :  { %v265_v50 = vmul.f32 %v263_v49, %v244_v39 }
 0x373   :  { %v276_v51 = vpack.c.bf16 %v265_v50, %v265_v50  ;;  %267 = vrot.lane.b32.xlu0 %v265_v50, %s562_s26 }
 0x375   :  { %289 = vrot.lane.b32.xlu1 %v276_v51, %s562_s26 }
 0x379   :  { %272 = vrot.lane.b32.xlu1 %v259_v45, %s563_s21 }
 0x3e5   :  { %v268_v52 = vpop.permute.xlu0 %267 }
 0x3e6   :  { %270 = vst.msk [vmem:[#allocation7] sm:$0xff] %vm69_vm1, %v268_v52 }
 0x3e7   :  { %v290_v53 = vpop.permute.xlu1 %289 }
 0x3e8   :  { %430 = vmatmul.mubr.msk.bf16.vlgmr.msra.gmra.mrb[4].mxu0 %vm69_vm1, %v290_v53 }
 0x3eb   :  { %v273_v54 = vpop.permute.xlu1 %272 }
 0x3ec   :  { %275 = vst.msk [vmem:[#allocation8] sm:$0xff] %vm69_vm1, %v273_v54 }
 0x3ed   :  { %515 = shalt.err (!%p512_p6)
}
 0x3ee   :  { %s516_s3 = scalar_lea.hbm %s752_s10, 128 }
 0x3ef   :  { %p517_p7 = scmp.ne.s32.totalorder %s752_s10, %s516_s3  ;;  %p520_p8 = scmp.lt.u32.totalorder %s516_s3, %s752_s10 }
 0x3f1   :  { %p522_p9 = pnand %p520_p8, %p517_p7 }
 0x3f3   :  { %525 = shalt.err (!%p522_p9)
}
 0x3f4   :  { %359 = dma.vmem_to_hbm [thread:$0]  %s357_s2, 128, %s752_s10, [#allocation4]  }
 0x3f5   :  { %s526_s29 = scalar_lea.vmem %s367_s22, 128  ;;  %p531_p11 = scmp.lt.s32.totalorder %s367_s22, %s367_s22 }
 0x3f6   :  { %p527_p10 = scmp.ne.s32.totalorder %s367_s22, %s526_s29  ;;  %p532_p12 = scmp.lt.s32.totalorder %s526_s29, %s526_s29 }
 0x3f8   :  { %p533_p13 = por %p532_p12, %p531_p11 }
 0x3fa   :  { %p534_p0 = pnand %p533_p13, %p527_p10 }
 0x3fc   :  { %537 = shalt.err (!%p534_p0)
}
 0x3fd   :  { %s538_s13 = scalar_lea.hbm %s753_s11, 128 }
 0x3fe   :  { %p539_p1 = scmp.ne.s32.totalorder %s753_s11, %s538_s13  ;;  %p542_p2 = scmp.lt.u32.totalorder %s538_s13, %s753_s11 }
 0x400   :  { %p544_p3 = pnand %p542_p2, %p539_p1 }
 0x402   :  { %547 = shalt.err (!%p544_p3)
}
 0x403   :  { %369 = dma.vmem_to_hbm [thread:$0]  %s367_s22, 128, %s753_s11, [#allocation9]   ;;  %v393_v55 = vld [vmem:[%s750_s8] ss:$0 sm:$0xff]  ;;  %vm346_vm8 = vcmask 72704  }
 0x4bb   :  { %v340_v56 = vpop.f32.mrb[4].mxu0 }
 0x4bc   :  { %v341_v57 = vadd.f32 %v393_v55, %v340_v56  ;;  %v431_v58 = vpop.f32.mrb[5].mxu0 }
 0x4bd   :  { %v343_v59 = vpop.f32.mrb[6].mxu0 }
 0x4be   :  { %347 = vst.msk [vmem:[%s751_s9] sm:$0xff] %vm346_vm8, %v341_v57  ;;  %v432_v60 = vpop.f32.mrb[7].mxu0 }
 0x4bf   :  { %552 = dma.done.wait [#allocation4], 128  }
 0x4c0   :  { %553 = vsyncadd [#allocation4], 4294967168 }
 0x4c1   :  { %554 = dma.done.wait [#allocation9], 128  }
 0x4c2   :  { %555 = vsyncadd [#allocation9], 4294967168 }
 0x4c3   :  { %378 = vsyncpa [#allocation3], 1 }
 0x4c4   :  { %379 = vsyncpa [#allocation6], 1 }
 0x4c5   :  { %380 = vsyncpa [#allocation4], 1 }
 0x4c6   :  { %381 = vsyncpa [#allocation9], 1 }

</bundles_post_ra>
